<compile_context>
chip_gen: v5e
topology: v5e:2x2
jax: 0.10.0
libtpu: 0.0.40
codegen_flags: <defaults>
</compile_context>

<pallas_src>
import functools
import math

import jax
import jax.numpy as jnp
from jax.experimental import pallas as pl
from jax.experimental.pallas import tpu as pltpu


def _round_up(x, m):
    return (x + m - 1) // m * m


# ----------------------------------------------------------------------------
# Kernel: full multi-head-attention forward for a (Bt, S, DP) batch block.
# ----------------------------------------------------------------------------
def mha_kernel(x_ref, wqkv_ref, bqkv_ref, wo_ref, bo_ref, o_ref, *, scale):
    bt, s, dp = x_ref.shape

    # x arrives in bf16, lane-dense (DP % 128 == 0), zero-padded columns.
    x2 = x_ref[...].reshape(bt * s, dp)

    # Fused Q/K/V projection: one (Bt*S, DP) @ (DP, 3*DP) bf16 matmul, f32 acc.
    qkv = (
        jnp.dot(x2, wqkv_ref[...], preferred_element_type=jnp.float32)
        + bqkv_ref[...]
    ).reshape(bt, s, 3 * dp)

    # 128-lane-aligned slices of the fused projection (no cross-lane shuffles).
    q = qkv[..., 0 * dp:1 * dp].astype(jnp.bfloat16)
    k = qkv[..., 1 * dp:2 * dp].astype(jnp.bfloat16)
    v = qkv[..., 2 * dp:3 * dp].astype(jnp.bfloat16)

    # Scaled dot-product attention, batched over the Bt rows of this block.
    energy = (
        jnp.einsum("bqd,bkd->bqk", q, k, preferred_element_type=jnp.float32)
        * scale
    )

    # Softmax along the key axis: f32 statistics, EUP reciprocal.  The
    # normalisation multiplies the (S, DP) context, not the (S, S) tile.
    m = jnp.max(energy, axis=-1, keepdims=True)
    p = jnp.exp(energy - m)
    inv_l = pl.reciprocal(jnp.sum(p, axis=-1, keepdims=True), approx=True)

    ctx = (
        jnp.einsum(
            "bqk,bkd->bqd",
            p.astype(jnp.bfloat16),
            v,
            preferred_element_type=jnp.float32,
        )
        * inv_l
    )

    # Output projection, fused in the same kernel; bf16 lane-dense store.
    out = (
        jnp.dot(
            ctx.reshape(bt * s, dp).astype(jnp.bfloat16),
            wo_ref[...],
            preferred_element_type=jnp.float32,
        )
        + bo_ref[...]
    )
    o_ref[...] = out.reshape(bt, s, dp).astype(o_ref.dtype)


# ----------------------------------------------------------------------------
# Wrapper
# ----------------------------------------------------------------------------
def _choose_block_batch(b, s, *, target_rows=512, min_grid=2):
    """Largest divisor bt of b such that grid length b//bt stays >= min_grid
    (megacore / 2nd TC), stopping once bt*s rows already feed the MXU well."""
    best = 1
    for bt in range(1, b + 1):
        if b % bt:
            continue
        if b // bt < min(min_grid, b):
            continue
        best = bt
        if bt * s >= target_rows:
            break
    return best


def multi_head_attention(x, params_f32, *, block_batch=None):
    """x: (B, N, max_len, D) -> (B, N, max_len, D) bf16.  mask=None path."""
    wq, bq, wk, bk, wv, bv, wo, bo = params_f32
    b, n, l, d = x.shape
    s = n * l
    dp = _round_up(d, 128)          # lane-dense padded model dim
    pad = dp - d

    if block_batch is None:
        block_batch = _choose_block_batch(b, s)
    bt = block_batch
    assert b % bt == 0

    def pad_w(w):                   # (d, d) -> (dp, dp), zero pad
        return jnp.pad(w, ((0, pad), (0, pad)))

    def pad_b(bvec):                # (1, d) -> (1, dp), zero pad
        return jnp.pad(bvec, ((0, 0), (0, pad)))

    # Fused, padded Q/K/V weights -> (DP, 3*DP) bf16; biases stay f32.
    wqkv = jnp.concatenate([pad_w(wq), pad_w(wk), pad_w(wv)], axis=1)
    wqkv = wqkv.astype(jnp.bfloat16)
    bqkv = jnp.concatenate([pad_b(bq), pad_b(bk), pad_b(bv)], axis=1)
    wo_p = pad_w(wo).astype(jnp.bfloat16)
    bo_p = pad_b(bo)

    # bf16, lane-dense activations: (B, S, DP) with zero pad columns.
    x3 = jnp.pad(x.reshape(b, s, d), ((0, 0), (0, 0), (0, pad)))
    x3 = x3.astype(jnp.bfloat16)

    kernel = functools.partial(mha_kernel, scale=1.0 / math.sqrt(d))

    flops = 2 * b * s * 4 * dp * dp + 4 * b * s * s * dp
    bytes_accessed = (
        x3.size * 2 + wqkv.size * 2 + wo_p.size * 2
        + bqkv.size * 4 + bo_p.size * 4 + b * s * dp * 2
    )

    out = pl.pallas_call(
        kernel,
        out_shape=jax.ShapeDtypeStruct((b, s, dp), jnp.bfloat16),
        grid=(b // bt,),
        in_specs=[
            pl.BlockSpec((bt, s, dp), lambda i: (i, 0, 0)),
            # Constant-index weight blocks (reused across every grid step).
            # TODO(synk): single-buffer via pipeline_mode=pl.Buffered(1) at
            # production dims to halve their VMEM footprint on v7x.
            pl.BlockSpec(wqkv.shape, lambda i: (0, 0)),
            pl.BlockSpec(bqkv.shape, lambda i: (0, 0)),
            pl.BlockSpec(wo_p.shape, lambda i: (0, 0)),
            pl.BlockSpec(bo_p.shape, lambda i: (0, 0)),
        ],
        out_specs=pl.BlockSpec((bt, s, dp), lambda i: (i, 0, 0)),
        compiler_params=pltpu.CompilerParams(
            dimension_semantics=("parallel",),
            vmem_limit_bytes=32 * 1024 * 1024,
        ),
        cost_estimate=pl.CostEstimate(
            flops=flops,
            transcendentals=b * s * s,
            bytes_accessed=bytes_accessed,
        ),
    )(x3, wqkv, bqkv, wo_p, bo_p)

    # Drop the zero pad columns and restore the (B, N, max_len, D) view.
    return out[..., :d].reshape(b, n, l, d)


# ----------------------------------------------------------------------------
# Pure-JAX f32 reference (mirrors the PyTorch forward) for a sanity check.
# ----------------------------------------------------------------------------
def mha_reference(x, params_f32):
    wq, bq, wk, bk, wv, bv, wo, bo = params_f32
    b, n, l, d = x.shape
    xf = x.reshape(b, n * l, d)
    q = xf @ wq + bq
    k = xf @ wk + bk
    v = xf @ wv + bv
    energy = jnp.einsum("bqd,bkd->bqk", q, k) / math.sqrt(d)
    attn = jax.nn.softmax(energy, axis=-1)
    out = jnp.einsum("bqk,bkd->bqd", attn, v) @ wo + bo
    return out.reshape(b, n, l, d)


# ----------------------------------------------------------------------------
# Parameters (deterministic synthetic init; weights stored as (in, out) = W.T)
# ----------------------------------------------------------------------------
def make_attention_params(key, d, scale=0.05):
    ks = jax.random.split(key, 8)

    def lin(kw, kb, din, dout):
        w = jax.random.normal(kw, (din, dout), jnp.float32) * scale
        bvec = jax.random.normal(kb, (1, dout), jnp.float32) * scale
        return w, bvec

    wq, bq = lin(ks[0], ks[1], d, d)
    wk, bk = lin(ks[2], ks[3], d, d)
    wv, bv = lin(ks[4], ks[5], d, d)
    wo, bo = lin(ks[6], ks[7], d, d)
    return wq, bq, wk, bk, wv, bv, wo, bo


# ----------------------------------------------------------------------------
if __name__ == "__main__":
    B, N, MAX_LEN, IN_DIMS = 4, 4, 8, 32

    key = jax.random.PRNGKey(0)
    kx, kp = jax.random.split(key)

    x = jax.random.normal(kx, (B, N, MAX_LEN, IN_DIMS), jnp.float32)
    params = make_attention_params(kp, IN_DIMS)

    out = multi_head_attention(x, params)
    out = jax.block_until_ready(out)

    assert out.shape == (B, N, MAX_LEN, IN_DIMS), out.shape
    assert out.dtype == jnp.bfloat16, out.dtype
    out_f32 = out.astype(jnp.float32)
    assert bool(jnp.all(jnp.isfinite(out_f32)))

    ref = mha_reference(x, params)
    max_err = float(jnp.max(jnp.abs(out_f32 - ref)))
    assert max_err < 3e-2, f"max abs error vs f32 reference: {max_err}"

    print("KERNEL_OK")
</pallas_src>

<mosaic_0001>
module attributes {stable_mosaic.version = 11 : i64} {
  func.func @mha_kernel(%arg0: i32, %arg1: memref<2x32x128xbf16, #tpu.memory_space<vmem>>, %arg2: memref<128x384xbf16, #tpu.memory_space<vmem>>, %arg3: memref<1x384xf32, #tpu.memory_space<vmem>>, %arg4: memref<128x128xbf16, #tpu.memory_space<vmem>>, %arg5: memref<1x128xf32, #tpu.memory_space<vmem>>, %arg6: memref<2x32x128xbf16, #tpu.memory_space<vmem>>) attributes {dimension_semantics = [#tpu.dimension_semantics<parallel>], iteration_bounds = array<i64: 2>, scalar_prefetch = 0 : i64, scratch_operands = 0 : i64, tpu.core_type = #tpu.core_type<tc>, window_params = [{transform_indices = @transform_0, window_bounds = array<i64: 2, 32, 128>}, {pipeline_mode = #tpu.pipeline_mode<synchronous>, transform_indices = @transform_1, window_bounds = array<i64: 128, 384>}, {pipeline_mode = #tpu.pipeline_mode<synchronous>, transform_indices = @transform_2, window_bounds = array<i64: 1, 384>}, {pipeline_mode = #tpu.pipeline_mode<synchronous>, transform_indices = @transform_3, window_bounds = array<i64: 128, 128>}, {pipeline_mode = #tpu.pipeline_mode<synchronous>, transform_indices = @transform_4, window_bounds = array<i64: 1, 128>}, {transform_indices = @transform_5, window_bounds = array<i64: 2, 32, 128>}]} {
    %c0 = arith.constant 0 : index
    %c0_0 = arith.constant 0 : index
    %c0_1 = arith.constant 0 : index
    %0 = vector.load %arg1[%c0, %c0_0, %c0_1] : memref<2x32x128xbf16, #tpu.memory_space<vmem>>, vector<2x32x128xbf16>
    %1 = vector.shape_cast %0 : vector<2x32x128xbf16> to vector<64x128xbf16>
    %c0_2 = arith.constant 0 : index
    %c0_3 = arith.constant 0 : index
    %2 = vector.load %arg2[%c0_2, %c0_3] : memref<128x384xbf16, #tpu.memory_space<vmem>>, vector<128x384xbf16>
    %cst = arith.constant dense<0.000000e+00> : vector<64x384xf32>
    %3 = tpu.matmul %1, %2, %cst {dimension_numbers = #tpu.dot_dimension_numbers<[1], [0], [0], [1], [0, 0, 1, 1], [], []>} : vector<64x128xbf16>, vector<128x384xbf16>, vector<64x384xf32> -> vector<64x384xf32>
    %c0_4 = arith.constant 0 : index
    %c0_5 = arith.constant 0 : index
    %4 = vector.load %arg3[%c0_4, %c0_5] : memref<1x384xf32, #tpu.memory_space<vmem>>, vector<1x384xf32>
    %5 = vector.broadcast %4 : vector<1x384xf32> to vector<64x384xf32>
    %6 = arith.addf %3, %5 : vector<64x384xf32>
    %7 = vector.shape_cast %6 : vector<64x384xf32> to vector<2x32x384xf32>
    %8 = vector.extract_strided_slice %7 {offsets = [0, 0, 0], sizes = [2, 32, 128], strides = [1, 1, 1]} : vector<2x32x384xf32> to vector<2x32x128xf32>
    %9 = arith.truncf %8 : vector<2x32x128xf32> to vector<2x32x128xbf16>
    %10 = vector.extract_strided_slice %7 {offsets = [0, 0, 128], sizes = [2, 32, 128], strides = [1, 1, 1]} : vector<2x32x384xf32> to vector<2x32x128xf32>
    %11 = arith.truncf %10 : vector<2x32x128xf32> to vector<2x32x128xbf16>
    %12 = vector.extract_strided_slice %7 {offsets = [0, 0, 256], sizes = [2, 32, 128], strides = [1, 1, 1]} : vector<2x32x384xf32> to vector<2x32x128xf32>
    %13 = arith.truncf %12 : vector<2x32x128xf32> to vector<2x32x128xbf16>
    "tpu.trace_start"() <{level = 10 : i32, message = "bqd,bkd->bqk"}> : () -> ()
    %cst_6 = arith.constant dense<0.000000e+00> : vector<2x32x32xf32>
    %14 = tpu.matmul %9, %11, %cst_6 {dimension_numbers = #tpu.dot_dimension_numbers<[2], [2], [1], [1], [0, 0, 0, 1, 1, 1], [0], [0]>} : vector<2x32x128xbf16>, vector<2x32x128xbf16>, vector<2x32x32xf32> -> vector<2x32x32xf32>
    "tpu.trace_stop"() : () -> ()
    %cst_7 = arith.constant 0.176776692 : f32
    %15 = vector.broadcast %cst_7 : f32 to vector<2x32x32xf32>
    %16 = arith.mulf %14, %15 : vector<2x32x32xf32>
    %cst_8 = arith.constant dense<0xFF800000> : vector<2x32xf32>
    %17 = vector.multi_reduction <maximumf>, %16, %cst_8 [2] : vector<2x32x32xf32> to vector<2x32xf32>
    %18 = vector.shape_cast %17 : vector<2x32xf32> to vector<2x32x1xf32>
    %19 = vector.broadcast %18 : vector<2x32x1xf32> to vector<2x32x32xf32>
    %20 = arith.subf %16, %19 : vector<2x32x32xf32>
    %21 = math.exp %20 : vector<2x32x32xf32>
    %cst_9 = arith.constant dense<0.000000e+00> : vector<2x32xf32>
    %22 = vector.multi_reduction <add>, %21, %cst_9 [2] : vector<2x32x32xf32> to vector<2x32xf32>
    %23 = vector.shape_cast %22 : vector<2x32xf32> to vector<2x32x1xf32>
    %24 = tpu.reciprocal %23 {approx = true} : vector<2x32x1xf32> -> vector<2x32x1xf32>
    %25 = arith.truncf %21 : vector<2x32x32xf32> to vector<2x32x32xbf16>
    "tpu.trace_start"() <{level = 10 : i32, message = "bqk,bkd->bqd"}> : () -> ()
    %cst_10 = arith.constant dense<0.000000e+00> : vector<2x32x128xf32>
    %26 = tpu.matmul %25, %13, %cst_10 {dimension_numbers = #tpu.dot_dimension_numbers<[2], [1], [1], [2], [0, 0, 0, 1, 1, 2], [0], [0]>} : vector<2x32x32xbf16>, vector<2x32x128xbf16>, vector<2x32x128xf32> -> vector<2x32x128xf32>
    "tpu.trace_stop"() : () -> ()
    %27 = vector.broadcast %24 : vector<2x32x1xf32> to vector<2x32x128xf32>
    %28 = arith.mulf %26, %27 : vector<2x32x128xf32>
    %29 = vector.shape_cast %28 : vector<2x32x128xf32> to vector<64x128xf32>
    %30 = arith.truncf %29 : vector<64x128xf32> to vector<64x128xbf16>
    %c0_11 = arith.constant 0 : index
    %c0_12 = arith.constant 0 : index
    %31 = vector.load %arg4[%c0_11, %c0_12] : memref<128x128xbf16, #tpu.memory_space<vmem>>, vector<128x128xbf16>
    %cst_13 = arith.constant dense<0.000000e+00> : vector<64x128xf32>
    %32 = tpu.matmul %30, %31, %cst_13 {dimension_numbers = #tpu.dot_dimension_numbers<[1], [0], [0], [1], [0, 0, 1, 1], [], []>} : vector<64x128xbf16>, vector<128x128xbf16>, vector<64x128xf32> -> vector<64x128xf32>
    %c0_14 = arith.constant 0 : index
    %c0_15 = arith.constant 0 : index
    %33 = vector.load %arg5[%c0_14, %c0_15] : memref<1x128xf32, #tpu.memory_space<vmem>>, vector<1x128xf32>
    %34 = vector.broadcast %33 : vector<1x128xf32> to vector<64x128xf32>
    %35 = arith.addf %32, %34 : vector<64x128xf32>
    %36 = vector.shape_cast %35 : vector<64x128xf32> to vector<2x32x128xf32>
    %37 = arith.truncf %36 : vector<2x32x128xf32> to vector<2x32x128xbf16>
    %c0_16 = arith.constant 0 : index
    %c0_17 = arith.constant 0 : index
    %c0_18 = arith.constant 0 : index
    %38 = vector.load %arg6[%c0_16, %c0_17, %c0_18] : memref<2x32x128xbf16, #tpu.memory_space<vmem>>, vector<2x32x128xbf16>
    tpu.vector_store %arg6[%c0_16, %c0_17, %c0_18], %37 {strides = array<i32>} : memref<2x32x128xbf16, #tpu.memory_space<vmem>>, vector<2x32x128xbf16>,
    return
  }
  func.func @transform_0(%arg0: i32) -> (i32, i32, i32) {
    %c0_i32 = arith.constant 0 : i32
    %c0_i32_0 = arith.constant 0 : i32
    %c0_i32_1 = arith.constant 0 : i32
    return %arg0, %c0_i32, %c0_i32_0 : i32, i32, i32
  }
  func.func @transform_1(%arg0: i32) -> (i32, i32) {
    %c0_i32 = arith.constant 0 : i32
    %c0_i32_0 = arith.constant 0 : i32
    %c0_i32_1 = arith.constant 0 : i32
    return %c0_i32, %c0_i32_0 : i32, i32
  }
  func.func @transform_2(%arg0: i32) -> (i32, i32) {
    %c0_i32 = arith.constant 0 : i32
    %c0_i32_0 = arith.constant 0 : i32
    %c0_i32_1 = arith.constant 0 : i32
    return %c0_i32, %c0_i32_0 : i32, i32
  }
  func.func @transform_3(%arg0: i32) -> (i32, i32) {
    %c0_i32 = arith.constant 0 : i32
    %c0_i32_0 = arith.constant 0 : i32
    %c0_i32_1 = arith.constant 0 : i32
    return %c0_i32, %c0_i32_0 : i32, i32
  }
  func.func @transform_4(%arg0: i32) -> (i32, i32) {
    %c0_i32 = arith.constant 0 : i32
    %c0_i32_0 = arith.constant 0 : i32
    %c0_i32_1 = arith.constant 0 : i32
    return %c0_i32, %c0_i32_0 : i32, i32
  }
  func.func @transform_5(%arg0: i32) -> (i32, i32, i32) {
    %c0_i32 = arith.constant 0 : i32
    %c0_i32_0 = arith.constant 0 : i32
    %c0_i32_1 = arith.constant 0 : i32
    return %arg0, %c0_i32, %c0_i32_0 : i32, i32, i32
  }
}

</mosaic_0001>

<bundles_post_ra>
// kernel: tpu_custom_call.1
= control target key start
LH: loop header
LB: loop body
LE: loop exit
PB: predicated region body
PF: predicated region fallthrough
CT: control target
= control target key end

     0   :  { %10 = vsyncpa [#allocation3], 0  ;;  %s1988_s0 = inlined_call_operand.hbm [shape: bf16[4,32,128], index: 0, kind: input, shape index: {}]   ;;  %s1989_s1 = inlined_call_operand.hbm [shape: bf16[128,384], index: 1, kind: input, shape index: {}]   ;;  %s1990_s2 = inlined_call_operand.hbm [shape: f32[1,384], index: 2, kind: input, shape index: {}]   ;;  %s1991_s3 = inlined_call_operand.hbm [shape: bf16[128,128], index: 3, kind: input, shape index: {}]   ;;  %s1992_s4 = inlined_call_operand.vmem [shape: f32[1,128], index: 4, kind: input, shape index: {}]   ;;  %s1993_s5 = inlined_call_operand.hbm [shape: bf16[4,32,128], index: 5, kind: output, shape index: {}]  }
   0x1   :  { %12 = vsyncpa [#allocation3 + $0x1], 0 }
   0x2   :  { %13 = vsyncpa [#allocation6], 0 }
   0x3   :  { %14 = vsyncpa [#allocation9], 0 }
   0x4   :  { %15 = vsyncpa [#allocation4], 0 }
   0x5   :  { %17 = vsyncpa [#allocation4 + $0x1], 0  ;;  %s1721_s18 = smov 0   ;;  %s1723_s19 = smov 0  }
   0x6   :  { %s1725_s20 = smov 0   ;;  %s1727_s21 = smov 0  }
   0x7 LB: > { %s1742_s22 = sadd.s32 4294967295, %s1680_s21   ;;  %s1129_s23 = sadd.s32 4294967294, %s1680_s21   ;;  %s1680_s21 = sphi %s1727_s21, %s2006_s21   ;;  %s1676_s20 = sphi %s1725_s20, %s2005_s20   ;;  %s1672_s19 = sphi %s1723_s19, %s2004_s19   ;;  %s1668_s18 = sphi %s1721_s18, %s2003_s18  }
   0x8   : > { %p43_p0 = scmp.ne.s32.totalorder %s1672_s19, %s1668_s18  ;;  %p44_p1 = scmp.eq.s32.totalorder %s1742_s22, 0 }
   0x9   : > { %p151_p2 = scmp.eq.s32.totalorder %s1742_s22, 1  ;;  %p157_p3 = scmp.eq.s32.totalorder %s1129_s23, 1 }
   0xa   : > { %p1751_p4 = por %p44_p1, %p43_p0  ;;  %p1130_p5 = scmp.ge.s32.totalorder %s1680_s21, 1 }
   0xb   : > { %p1756_p6 = por %p157_p3, %p43_p0  ;;  %p164_p7 = scmp.lt.s32.totalorder %s1680_s21, 3 }
   0xc   : > { %s175_s28 = sshll.u32 %s1989_s1, 4  ;;  %s1682_s30 = smov [#allocation5]   ;;  %s176_s28 = int_to_ptr.hbm [resolvable:$true] %s175_s28 }
   0xd   : > { %p1764_p8 = pnand %p1130_p5, %p164_p7  ;;  %s177_s6 = sshll.u32 %s1682_s30, 4  ;;  %s178_s6 = int_to_ptr.vmem [resolvable:$true] %s177_s6 }
   0xe   : > { %s190_s10 = sshll.u32 %s1990_s2, 4  ;;  %s1683_s11 = smov 192   ;;  %s191_s10 = int_to_ptr.hbm [resolvable:$true] %s190_s10 }
   0xf   : > { %p1386_p9 = pneg %p1764_p8  ;;  %s1684_s12 = smov 12  }
  0x10   : > { %s1685_s13 = smov [#allocation7]   ;;  %s201_s17 = sshll.u32 %s1991_s3, 4  ;;  %s202_s17 = int_to_ptr.hbm [resolvable:$true] %s201_s17 }
  0x11   : > { %p1772_p10 = pnand %p1386_p9, %p44_p1  ;;  %s192_s14 = sshll.u32 %s1685_s13, 4  ;;  %s193_s14 = int_to_ptr.vmem [resolvable:$true] %s192_s14 }
  0x12   : > { %s1686_s23 = smov [#allocation8]   ;;  %s1994_s27 = smov 64  }
  0x13   : > { %1389 = dma.hbm_to_vmem [thread:$0]  (!%p1772_p10), %s176_s28, 3072, %s178_s6, [#allocation6], %s1683_s11, %s1683_s11, %s1684_s12  }
  0x14   : > { %1392 = dma.hbm_to_vmem [thread:$0]  (!%p1772_p10), %s191_s10, 48, %s193_s14, [#allocation6]  }
  0x15   : > { %s203_s26 = sshll.u32 %s1686_s23, 4  ;;  %s1688_s28 = smov 4   ;;  %s204_s26 = int_to_ptr.vmem [resolvable:$true] %s203_s26 }
  0x16   : > { %1395 = dma.hbm_to_vmem [thread:$0]  (!%p1772_p10), %s202_s17, 1024, %s204_s26, [#allocation9], %s1994_s27, %s1994_s27, %s1688_s28  }
  0x17   : > { %s1793_s30 = sadd.s32 1, %s1680_s21   ;;  %s30_s8 = sadd.s32 1, %s1676_s20 }
  0x18   : > { %s27_s6 = ssub.s32 %s1680_s21, %s1793_s30  ;;  %p37_p13 = scmp.ne.s32.totalorder %s1676_s20, %s1672_s19 }
  0x19   : > { %p28_p12 = scmp.eq.s32.totalorder %s27_s6, 0  ;;  %p38_p0 = scmp.eq.s32.totalorder %s1680_s21, 0 }
  0x1a   : > { %p1806_p3 = por %p151_p2, %p37_p13  ;;  %p1407_p5 = scmp.lt.s32.totalorder %s1680_s21, 2 }
  0x1b   : > { %s1802_s9 = scalar_select %p28_p12, %s1676_s20, %s30_s8  }
  0x1c   : > { %s220_s7 = sand.u32 1, %s1676_s20   ;;  %s1300_s11 = sshll.u32 %s1680_s21, 5 }
  0x1d   : > { %p39_p7 = por %p38_p0, %p37_p13  ;;  %s1135_s12 = sshll.u32 %s220_s7, 5 }
  0x1e   : > { %s230_s15 = scalar_lea.hbm %s1988_s0, %s1300_s11  ;;  %s224_s17 = scalar_lea.vmem [#allocation2], %s1135_s12 }
  0x1f   : > { %s231_s16 = sshll.u32 %s230_s15, 4  ;;  %s233_s23 = sshll.u32 %s224_s17, 4  ;;  %s232_s16 = int_to_ptr.hbm [resolvable:$true] %s231_s16  ;;  %s234_s23 = int_to_ptr.vmem [resolvable:$true] %s233_s23 }
  0x20   : > { %p1816_p9 = pnand %p1407_p5, %p39_p7  ;;  %s221_s6 = scalar_lea.sflag [#allocation3], %s220_s7 }
  0x21   : > { %s1576_s8 = sshra.s32 %s232_s16, 4  ;;  %s1583_s12 = scalar_lea.hbm %s1988_s0, 64  ;;  %s1577_s8 = int_to_ptr.hbm [resolvable:$true] %s1576_s8 }
  0x22   : > { %s1578_s27 = scalar_lea.hbm %s1577_s8, 32  ;;  %p1580_p10 = pneg %p1816_p9 }
  0x23   : > { %p1579_p2 = scmp.ne.s32.totalorder %s1577_s8, %s1578_s27  ;;  %p1584_p0 = scmp.lt.s32.totalorder %s1577_s8, %s1988_s0 }
  0x24   : > { %p1585_p5 = scmp.lt.s32.totalorder %s1583_s12, %s1578_s27 }
  0x25   : > { %p1581_p12 = pnand %p1580_p10, %p1579_p2 }
  0x26   : > { %p1586_p7 = por %p1585_p5, %p1584_p0 }
  0x27   : > { %p1582_p13 = pneg %p1581_p12 }
  0x29   : > { %p1587_p11 = pnand %p1586_p7, %p1582_p13 }
  0x2b   : > { %1590 = shalt.err (!%p1587_p11)
}
  0x2c   : > { %s2001_s7 = smov 64   ;;  %245 = sbr.rel (%p1764_p8) target bundleno = 871 (0x367), region = 40 }
  0x2d   : > { %1399 = dma.hbm_to_vmem [thread:$0]  (!%p1816_p9), %s232_s16, 512, %s234_s23, %s221_s6, %s2001_s7, %s2001_s7, %s1688_s28  }
  0x2e   : > { %s1836_s17 = sand.u32 (!%p1764_p8), 1, %s1672_s19  }
  0x2f   : > { %s1140_s27 = sshll.u32 (!%p1764_p8), %s1836_s17, 5  ;;  %s248_s8 = scalar_lea.sflag (!%p1764_p8), [#allocation3], %s1836_s17 }
  0x30   : > { %s1842_s11 = scalar_lea.vmem (!%p1764_p8), [#allocation2], %s1140_s27 }
  0x31   : > { %1651 = dma.done.wait (%p1751_p4), %s248_s8, 512  }
  0x32   : > { %1653 = vsyncadd (%p1751_p4), %s248_s8, 4294966784 }
  0x33   : > { %1655 = dma.done.wait (%p44_p1), [#allocation6], 3120  }
  0x34   : > { %1657 = vsyncadd (%p44_p1), [#allocation6], 4294964176 }
  0x35   : > { %1659 = dma.done.wait (%p44_p1), [#allocation9], 1024  }
  0x36   : > { %1661 = vsyncadd (%p44_p1), [#allocation9], 4294966272  ;;  %v1326_v0 = vld [vmem:[#allocation5 + $0xac] sm:$0xf]  ;;  %v1249_v1 = vld [vmem:[#allocation5 + $0xb4] sm:$0xf0] }
  0x37   : > { %v1323_v2 = vld [vmem:[#allocation5 + $0x94] sm:$0xf]  ;;  %v1252_v3 = vor.u32 %v1326_v0, %v1249_v1  ;;  %v1237_v4 = vld [vmem:[#allocation5 + $0x9c] sm:$0xf0]  ;;  %v1320_v6 = vld [vmem:[#allocation5 + $0x7c] sm:$0xf] }
  0x38   : > { %v1240_v5 = vor.u32 %v1323_v2, %v1237_v4  ;;  %v1225_v7 = vld [vmem:[#allocation5 + $0x84] sm:$0xf0]  ;;  %v1327_v9 = vld [vmem:[#allocation5 + $0xb0] sm:$0xf0]  ;;  %v1235_v11 = vld [vmem:[#allocation5 + $0x90] sm:$0xf] }
  0x39   : > { %526 = vmatpush.bf16.msra.mxu1 %v1252_v3  ;;  %1362 = vmatpush.bf16.msra.mxu2 %v1252_v3  ;;  %v1247_v8 = vld [vmem:[#allocation5 + $0xa8] sm:$0xf]  ;;  %v1324_v12 = vld [vmem:[#allocation5 + $0x98] sm:$0xf0]  ;;  %v1228_v13 = vor.u32 %v1320_v6, %v1225_v7  ;;  %v1317_v14 = vld [vmem:[#allocation5 + $0x64] sm:$0xf] }
  0x3a   : > { %v1248_v10 = vor.u32 %v1327_v9, %v1247_v8  ;;  %v1213_v15 = vld [vmem:[#allocation5 + $0x6c] sm:$0xf0]  ;;  %v1236_v16 = vor.u32 %v1324_v12, %v1235_v11  ;;  %v1223_v17 = vld [vmem:[#allocation5 + $0x78] sm:$0xf]  ;;  %v1321_v18 = vld [vmem:[#allocation5 + $0x80] sm:$0xf0] }
  0x3b   : > { %v1216_v19 = vor.u32 %v1317_v14, %v1213_v15  ;;  %v1314_v20 = vld [vmem:[#allocation5 + $0x4c] sm:$0xf]  ;;  %v1201_v21 = vld [vmem:[#allocation5 + $0x54] sm:$0xf0]  ;;  %v1224_v22 = vor.u32 %v1321_v18, %v1223_v17  ;;  %v1211_v23 = vld [vmem:[#allocation5 + $0x60] sm:$0xf] }
  0x3c   : > { %497 = vmatpush.bf16.msra.mxu0 %v1248_v10  ;;  %v1318_v24 = vld [vmem:[#allocation5 + $0x68] sm:$0xf0]  ;;  %v1204_v25 = vor.u32 %v1314_v20, %v1201_v21  ;;  %v1311_v26 = vld [vmem:[#allocation5 + $0x34] sm:$0xf]  ;;  %v1189_v27 = vld [vmem:[#allocation5 + $0x3c] sm:$0xf0] }
  0x3d   : > { %527 = vmatpush.bf16.msra.mxu1 %v1240_v5  ;;  %1363 = vmatpush.bf16.msra.mxu2 %v1240_v5  ;;  %v1212_v28 = vor.u32 %v1318_v24, %v1211_v23  ;;  %v1199_v29 = vld [vmem:[#allocation5 + $0x48] sm:$0xf]  ;;  %v1315_v30 = vld [vmem:[#allocation5 + $0x50] sm:$0xf0]  ;;  %v1192_v31 = vor.u32 %v1311_v26, %v1189_v27  ;;  %v1308_v32 = vld [vmem:[#allocation5 + $0x1c] sm:$0xf] }
  0x3e   : > { %v1177_v33 = vld [vmem:[#allocation5 + $0x24] sm:$0xf0]  ;;  %v1200_v34 = vor.u32 %v1315_v30, %v1199_v29  ;;  %v1187_v35 = vld [vmem:[#allocation5 + $0x30] sm:$0xf]  ;;  %v1312_v36 = vld [vmem:[#allocation5 + $0x38] sm:$0xf0] }
  0x3f   : > { %v1180_v37 = vor.u32 %v1308_v32, %v1177_v33  ;;  %v1305_v38 = vld [vmem:[#allocation5 + $0x4] sm:$0xf]  ;;  %v1165_v39 = vld [vmem:[#allocation5 + $0xc] sm:$0xf0]  ;;  %v1188_v40 = vor.u32 %v1312_v36, %v1187_v35  ;;  %v1175_v41 = vld [vmem:[#allocation5 + $0x18] sm:$0xf] }
  0x40   : > { %498 = vmatpush.bf16.msra.mxu0 %v1236_v16  ;;  %v1309_v42 = vld [vmem:[#allocation5 + $0x20] sm:$0xf0]  ;;  %v1168_v43 = vor.u32 %v1305_v38, %v1165_v39  ;;  %v1163_v45 = vld [vmem:[#allocation5] sm:$0xf]  ;;  %v1306_v46 = vld [vmem:[#allocation5 + $0x8] sm:$0xf0] }
  0x41   : > { %528 = vmatpush.bf16.msra.mxu1 %v1228_v13  ;;  %1364 = vmatpush.bf16.msra.mxu2 %v1228_v13  ;;  %v1176_v44 = vor.u32 %v1309_v42, %v1175_v41  ;;  %v1857_v47 = vld [vmem:[%s1842_s11] sm:$0xff]  ;;  %v1860_v48 = vld [vmem:[%s1842_s11 + $0x10] sm:$0xff]  ;;  %v1164_v49 = vor.u32 %v1306_v46, %v1163_v45  ;;  %v1866_v50 = vld [vmem:[%s1842_s11 + $0x8] sm:$0xff]  ;;  %vm702_vm0 = vcmask 261120   ;;  %s293_s28 = scalar_lea.vmem [#allocation10], %s1140_s27  ;;  %s1338_s16 = sshll.u32 %s1742_s22, 5 }
  0x42   : > { %v1869_v51 = vld [vmem:[%s1842_s11 + $0x18] sm:$0xff]  ;;  %v1255_v55 = vld [vmem:[#allocation5 + $0xb0] sm:$0xf]  ;;  %v1325_v60 = vld [vmem:[#allocation5 + $0xa0] sm:$0xf0]  ;;  %s1023_s6 = scalar_lea.hbm %s1993_s5, %s1338_s16  ;;  %s1024_s13 = sshll.u32 %s293_s28, 4  ;;  %s1025_s13 = int_to_ptr.vmem [resolvable:$true] %s1024_s13 }
  0x43   : > { %v1328_v56 = vld [vmem:[#allocation5 + $0xb8] sm:$0xf0]  ;;  %v1243_v57 = vld [vmem:[#allocation5 + $0x98] sm:$0xf]  ;;  %v1878_v63 = vld [vmem:[#allocation7] sm:$0x7] }
  0x44   : > { %499 = vmatpush.bf16.msra.mxu0 %v1224_v22  ;;  %v1256_v59 = vor.u32 %v1328_v56, %v1255_v55  ;;  %v1244_v61 = vor.u32 %v1325_v60, %v1243_v57  ;;  %v1231_v1 = vld [vmem:[#allocation5 + $0x80] sm:$0xf]  ;;  %v1322_v2 = vld [vmem:[#allocation5 + $0x88] sm:$0xf0]  ;;  %v1219_v3 = vld [vmem:[#allocation5 + $0x68] sm:$0xf] }
  0x45   : > { %529 = vmatpush.bf16.msra.mxu1 %v1216_v19  ;;  %1365 = vmatpush.bf16.msra.mxu2 %v1216_v19  ;;  %v340_v4 = vperm.slane %v1878_v63, 1  ;;  %v1232_v5 = vor.u32 %v1322_v2, %v1231_v1  ;;  %v1319_v6 = vld [vmem:[#allocation5 + $0x70] sm:$0xf0]  ;;  %v1207_v11 = vld [vmem:[#allocation5 + $0x50] sm:$0xf]  ;;  %v1882_v26 = vperm.slane %v1878_v63, 0 }
  0x46   : > { %v1220_v9 = vor.u32 %v1319_v6, %v1219_v3  ;;  %v1316_v12 = vld [vmem:[#allocation5 + $0x58] sm:$0xf0]  ;;  %v1195_v18 = vld [vmem:[#allocation5 + $0x38] sm:$0xf]  ;;  %v1313_v19 = vld [vmem:[#allocation5 + $0x40] sm:$0xf0] }
  0x47   : > { %v1208_v16 = vor.u32 %v1316_v12, %v1207_v11  ;;  %v1183_v33 = vld [vmem:[#allocation5 + $0x20] sm:$0xf]  ;;  %v1171_v41 = vld [vmem:[#allocation5 + $0x8] sm:$0xf]  ;;  %v1307_v42 = vld [vmem:[#allocation5 + $0x10] sm:$0xf0] }
  0x48   : > { %500 = vmatpush.bf16.msra.mxu0 %v1212_v28  ;;  %s1026_s12 = sshll.u32 %s1023_s6, 4  ;;  %s1011_s14 = scalar_lea.sflag [#allocation4], %s1836_s17  ;;  %s1027_s12 = int_to_ptr.hbm [resolvable:$true] %s1026_s12 }
  0x49   : > { %530 = vmatpush.bf16.msra.mxu1 %v1204_v25  ;;  %1366 = vmatpush.bf16.msra.mxu2 %v1204_v25  ;;  %v1196_v25 = vor.u32 %v1313_v19, %v1195_v18  ;;  %s1620_s15 = sshra.s32 %s1027_s12, 4  ;;  %s1626_s8 = scalar_lea.hbm %s1993_s5, 64  ;;  %s1621_s15 = int_to_ptr.hbm [resolvable:$true] %s1620_s15 }
  0x4a   : > { %s1622_s7 = scalar_lea.hbm %s1621_s15, 32  ;;  %p1627_p11 = scmp.lt.s32.totalorder %s1621_s15, %s1993_s5 }
  0x4b   : > { %p1623_p1 = scmp.ne.s32.totalorder %s1621_s15, %s1622_s7  ;;  %p1628_p9 = scmp.lt.s32.totalorder %s1626_s8, %s1622_s7 }
  0x4c   : > { %501 = vmatpush.bf16.msra.mxu0 %v1200_v34  ;;  %v1310_v34 = vld [vmem:[#allocation5 + $0x28] sm:$0xf0] }
  0x4d   : > { %531 = vmatpush.bf16.msra.mxu1 %v1192_v31  ;;  %1367 = vmatpush.bf16.msra.mxu2 %v1192_v31  ;;  %p1624_p4 = pnand %p1623_p1, %p1806_p3  ;;  %p1629_p2 = por %p1628_p9, %p1627_p11 }
  0x4f   : > { %p1625_p8 = pneg %p1624_p4 }
  0x50   : > { %502 = vmatpush.bf16.msra.mxu0 %v1188_v40 }
  0x51   : > { %532 = vmatpush.bf16.msra.mxu1 %v1180_v37  ;;  %1368 = vmatpush.bf16.msra.mxu2 %v1180_v37  ;;  %v1184_v37 = vor.u32 %v1310_v34, %v1183_v33  ;;  %p1630_p10 = pnand %p1629_p2, %p1625_p8 }
  0x54   : > { %503 = vmatpush.bf16.msra.mxu0 %v1176_v44 }
  0x55   : > { %533 = vmatpush.bf16.msra.mxu1 %v1168_v43  ;;  %1369 = vmatpush.bf16.msra.mxu2 %v1168_v43 }
  0x58   : > { %534 = vmatmul.bf16.vlgmr.msra.gmra.mxu1 %v1857_v47  ;;  %544 = vmatmul.bf16.vlgmr.msra.gmra.mxu2 %v1860_v48 }
  0x59   : > { %504 = vmatpush.bf16.msra.mxu0 %v1164_v49  ;;  %555 = vmatpush.bf16.msrb.mxu2 %v1256_v59 }
  0x5c   : > { %505 = vmatmul.bf16.vlgmr.msra.gmra.mxu0 %v1857_v47 }
  0x5d   : > { %556 = vmatpush.bf16.msrb.mxu2 %v1244_v61 }
  0x61   : > { %557 = vmatpush.bf16.msrb.mxu2 %v1232_v5 }
  0x65   : > { %558 = vmatpush.bf16.msrb.mxu2 %v1220_v9 }
  0x68   : > { %539 = vmatmul.bf16.gmra.mxu1 %v1866_v50  ;;  %549 = vmatmul.bf16.gmra.mxu2 %v1869_v51 }
  0x69   : > { %559 = vmatpush.bf16.msrb.mxu2 %v1208_v16 }
  0x6c   : > { %510 = vmatmul.bf16.gmra.mxu0 %v1866_v50 }
  0x6d   : > { %560 = vmatpush.bf16.msrb.mxu2 %v1196_v25 }
  0x71   : > { %561 = vmatpush.bf16.msrb.mxu2 %v1184_v37 }
  0x7c   : > { %515 = vmatmul.bf16.gmra.mxu0 %v1860_v48 }
  0x8c   : > { %520 = vmatmul.bf16.gmra.mxu0 %v1869_v51 }
  0xd5   : > { %v535_v52 = vpop.f32.mrf.mxu1 }
  0xd6   : > { %v536_v22 = vadd.f32 %v535_v52, %v340_v4  ;;  %v1172_v52 = vor.u32 %v1307_v42, %v1171_v41 }
  0xd8   : > { %v592_v35 = vpack.c.bf16 %v536_v22, %v536_v22  ;;  %562 = vmatpush.bf16.msrb.mxu2 %v1172_v52 }
  0xd9   : > { %v506_v58 = vpop.f32.mrf.mxu0 }
  0xda   : > { %v507_v38 = vadd.f32 %v506_v58, %v1882_v26  ;;  %v624_v49 = vunpack.c.l.b16 %v592_v35 }
  0xdb   : > { %v1876_v53 = vpop.f32.mrf.mxu2  ;;  %563 = vmatmul.bf16.vlgmr.msrb.gmra.mxu2 %v1857_v47 }
  0xdc   : > { %v546_v45 = vadd.f32 %v1876_v53, %v340_v4 }
  0xdd   : > { %v537_v54 = vpop.f32.mrf.mxu1 }
  0xde   : > { %v538_v20 = vadd.f32 %v537_v54, %v340_v4  ;;  %v584_v54 = vpack.c.bf16 %v507_v38, %v507_v38  ;;  %v596_v59 = vpack.c.bf16 %v546_v45, %v546_v45 }
  0xe0   : > { %v593_v29 = vpack.c.bf16 %v538_v20, %v538_v20  ;;  %v612_v61 = vunpack.c.l.b16 %v584_v54  ;;  %v667_v1 = vunpack.c.l.b16 %v596_v59 }
  0xe1   : > { %v508_v8 = vpop.f32.mrf.mxu0 }
  0xe2   : > { %v509_v40 = vadd.f32 %v508_v8, %v1882_v26  ;;  %v625_v43 = vunpack.c.l.b16 %v593_v29 }
  0xe3   : > { %v547_v62 = vpop.f32.mrf.mxu2 }
  0xe4   : > { %v548_v46 = vadd.f32 %v547_v62, %v340_v4  ;;  %v585_v55 = vpack.c.bf16 %v509_v40, %v509_v40  ;;  %v628_v57 = vpack.c.b16 %v625_v43, %v624_v49 }
  0xe5   : > { %v540_v0 = vpop.f32.mrf.mxu1 }
  0xe6   : > { %v541_v7 = vadd.f32 %v540_v0, %v340_v4  ;;  %v597_v60 = vpack.c.bf16 %v548_v46, %v548_v46  ;;  %v613_v0 = vunpack.c.l.b16 %v585_v55 }
  0xe8   : > { %v594_v14 = vpack.c.bf16 %v541_v7, %v541_v7  ;;  %v668_v2 = vunpack.c.l.b16 %v597_v60  ;;  %v616_v53 = vpack.c.b16 %v613_v0, %v612_v61 }
  0xe9   : > { %v511_v32 = vpop.f32.mrf.mxu0 }
  0xea   : > { %v626_v23 = vunpack.c.l.b16 %v594_v14  ;;  %v671_v62 = vpack.c.b16 %v668_v2, %v667_v1 }
  0xeb   : > { %v550_v10 = vpop.f32.mrf.mxu2  ;;  %568 = vmatmul.bf16.gmra.mxu2 %v1866_v50 }
  0xec   : > { %v551_v17 = vadd.f32 %v550_v10, %v340_v4 }
  0xed   : > { %v542_v13 = vpop.f32.mrf.mxu1 }
  0xee   : > { %v543_v15 = vadd.f32 %v542_v13, %v340_v4  ;;  %v598_v27 = vpack.c.bf16 %v551_v17, %v551_v17 }
  0xf0   : > { %v595_v21 = vpack.c.bf16 %v543_v15, %v543_v15  ;;  %v669_v39 = vunpack.c.l.b16 %v598_v27 }
  0xf1   : > { %v513_v58 = vpop.f32.mrf.mxu0 }
  0xf2   : > { %v627_v24 = vunpack.c.l.b16 %v595_v21  ;;  %v514_v5 = vadd.f32 %v513_v58, %v1882_v26 }
  0xf3   : > { %v552_v28 = vpop.f32.mrf.mxu2 }
  0xf4   : > { %v553_v30 = vadd.f32 %v552_v28, %v340_v4  ;;  %v629_v31 = vpack.c.b16 %v627_v24, %v626_v23  ;;  %v512_v4 = vadd.f32 %v511_v32, %v1882_v26  ;;  %v587_v7 = vpack.c.bf16 %v514_v5, %v514_v5 }
  0xf6   : > { %v599_v36 = vpack.c.bf16 %v553_v30, %v553_v30  ;;  %638 = vmatpush.bf16.xpose.msra.mxu3 %v629_v31  ;;  %v586_v6 = vpack.c.bf16 %v512_v4, %v512_v4  ;;  %v615_v9 = vunpack.c.l.b16 %v587_v7 }
  0xf8   : > { %v670_v44 = vunpack.c.l.b16 %v599_v36  ;;  %v614_v8 = vunpack.c.l.b16 %v586_v6 }
  0xf9   : > { %v516_v3 = vpop.f32.mrf.mxu0 }
  0xfa   : > { %v672_v56 = vpack.c.b16 %v670_v44, %v669_v39  ;;  %v617_v11 = vpack.c.b16 %v615_v9, %v614_v8  ;;  %v517_v47 = vadd.f32 %v516_v3, %v1882_v26 }
  0xfb   : > { %573 = vmatmul.bf16.gmra.mxu2 %v1860_v48 }
  0xfc   : > { %v588_v14 = vpack.c.bf16 %v517_v47, %v517_v47 }
  0xfe   : > { %639 = vmatpush.bf16.xpose.msra.mxu3 %v628_v57  ;;  %v655_v16 = vunpack.c.l.b16 %v588_v14 }
 0x101   : > { %v518_v10 = vpop.f32.mrf.mxu0 }
 0x102   : > { %v519_v12 = vadd.f32 %v518_v10, %v1882_v26 }
 0x104   : > { %v589_v15 = vpack.c.bf16 %v519_v12, %v519_v12 }
 0x105   : > { %640 = vmatmul.bf16.vlgmr.msra.gmra.mxu3 %v616_v53 }
 0x106   : > { %681 = vmatpush.bf16.xpose.msrb.mxu3 %v672_v56  ;;  %v656_v17 = vunpack.c.l.b16 %v589_v15 }
 0x108   : > { %v659_v18 = vpack.c.b16 %v656_v17, %v655_v16 }
 0x109   : > { %v521_v13 = vpop.f32.mrf.mxu0 }
 0x10a   : > { %v522_v20 = vadd.f32 %v521_v13, %v1882_v26 }
 0x10b   : > { %578 = vmatmul.bf16.gmra.mxu2 %v1869_v51  ;;  %v341_v51 = vperm.slane %v1878_v63, 2 }
 0x10c   : > { %v590_v21 = vpack.c.bf16 %v522_v20, %v522_v20 }
 0x10e   : > { %682 = vmatpush.bf16.xpose.msrb.mxu3 %v671_v62  ;;  %v657_v23 = vunpack.c.l.b16 %v590_v21 }
 0x111   : > { %v523_v19 = vpop.f32.mrf.mxu0 }
 0x112   : > { %v524_v50 = vadd.f32 %v523_v19, %v1882_v26 }
 0x114   : > { %v591_v22 = vpack.c.bf16 %v524_v50, %v524_v50 }
 0x115   : > { %645 = vmatmul.bf16.gmra.mxu3 %v617_v11 }
 0x116   : > { %v658_v24 = vunpack.c.l.b16 %v591_v22 }
 0x118   : > { %v660_v25 = vpack.c.b16 %v658_v24, %v657_v23 }
 0x125   : > { %683 = vmatmul.bf16.vlgmr.msrb.gmra.mxu3 %v659_v18 }
 0x135   : > { %688 = vmatmul.bf16.gmra.mxu3 %v660_v25 }
 0x15e   : > { %v564_v27 = vpop.f32.mrf.mxu2 }
 0x15f   : > { %v565_v37 = vadd.f32 %v564_v27, %v341_v51 }
 0x161   : > { %v600_v42 = vpack.c.bf16 %v565_v37, %v565_v37 }
 0x163   : > { %v805_v52 = vunpack.c.l.b16 %v600_v42 }
 0x166   : > { %v566_v30 = vpop.f32.mrf.mxu2 }
 0x167   : > { %v567_v38 = vadd.f32 %v566_v30, %v341_v51 }
 0x169   : > { %v601_v43 = vpack.c.bf16 %v567_v38, %v567_v38 }
 0x16b   : > { %v806_v54 = vunpack.c.l.b16 %v601_v43 }
 0x16d   : > { %v809_v60 = vpack.c.b16 %v806_v54, %v805_v52 }
 0x16e   : > { %v569_v33 = vpop.f32.mrf.mxu2 }
 0x16f   : > { %v570_v34 = vadd.f32 %v569_v33, %v341_v51 }
 0x171   : > { %v602_v40 = vpack.c.bf16 %v570_v34, %v570_v34 }
 0x173   : > { %v807_v45 = vunpack.c.l.b16 %v602_v40 }
 0x176   : > { %v571_v41 = vpop.f32.mrf.mxu2 }
 0x177   : > { %v572_v44 = vadd.f32 %v571_v41, %v341_v51 }
 0x179   : > { %v603_v46 = vpack.c.bf16 %v572_v44, %v572_v44 }
 0x17b   : > { %v808_v55 = vunpack.c.l.b16 %v603_v46 }
 0x17d   : > { %v810_v57 = vpack.c.b16 %v808_v55, %v807_v45 }
 0x17e   : > { %v574_v59 = vpop.f32.mrf.mxu2 }
 0x17f   : > { %825 = vmatpush.bf16.msra.mxu3 %v810_v57  ;;  %v575_v7 = vadd.f32 %v574_v59, %v341_v51 }
 0x181   : > { %v604_v47 = vpack.c.bf16 %v575_v7, %v575_v7 }
 0x183   : > { %826 = vmatpush.bf16.msra.mxu3 %v809_v60  ;;  %v852_v18 = vunpack.c.l.b16 %v604_v47 }
 0x186   : > { %v576_v1 = vpop.f32.mrf.mxu2 }
 0x187   : > { %v577_v8 = vadd.f32 %v576_v1, %v341_v51 }
 0x188   : > { %v641_v28 = vpop.f32.mrf.mxu3 }
 0x189   : > { %v1897_v29 = vmul.f32 0.17677669, %v641_v28  ;;  %v605_v12 = vpack.c.bf16 %v577_v8, %v577_v8 }
 0x18b   : > { %v703_v48 = vsel %vm702_vm0, %v1897_v29, -inf  ;;  %v853_v19 = vunpack.c.l.b16 %v605_v12 }
 0x18c   : > { %704 = vmax.xlane.f32.xlu0 %v703_v48 }
 0x18d   : > { %v856_v22 = vpack.c.b16 %v853_v19, %v852_v18 }
 0x18e   : > { %v579_v3 = vpop.f32.mrf.mxu2 }
 0x18f   : > { %v580_v4 = vadd.f32 %v579_v3, %v341_v51 }
 0x190   : > { %v643_v31 = vpop.f32.mrf.mxu3 }
 0x191   : > { %v1901_v26 = vmul.f32 0.17677669, %v643_v31  ;;  %v606_v10 = vpack.c.bf16 %v580_v4, %v580_v4 }
 0x193   : > { %v706_v32 = vsel %vm702_vm0, %v1901_v26, -inf  ;;  %v854_v14 = vunpack.c.l.b16 %v606_v10 }
 0x194   : > { %707 = vmax.xlane.f32.xlu0 %v706_v32 }
 0x196   : > { %v581_v11 = vpop.f32.mrf.mxu2 }
 0x197   : > { %v582_v13 = vadd.f32 %v581_v11, %v341_v51 }
 0x198   : > { %v646_v35 = vpop.f32.mrf.mxu3 }
 0x199   : > { %v1906_v36 = vmul.f32 0.17677669, %v646_v35  ;;  %v607_v15 = vpack.c.bf16 %v582_v13, %v582_v13 }
 0x19b   : > { %v709_v39 = vsel %vm702_vm0, %v1906_v36, -inf  ;;  %v855_v20 = vunpack.c.l.b16 %v607_v15 }
 0x19c   : > { %710 = vmax.xlane.f32.xlu1 %v709_v39 }
 0x19d   : > { %v857_v21 = vpack.c.b16 %v855_v20, %v854_v14 }
 0x19f   : > { %872 = vmatpush.bf16.msrb.mxu0 %v857_v21  ;;  %v1334_v21 = vld [vmem:[#allocation8 + $0x28] sm:$0xff] }
 0x1a0   : > { %v648_v63 = vpop.f32.mrf.mxu3 }
 0x1a1   : > { %v1910_v49 = vmul.f32 0.17677669, %v648_v63 }
 0x1a3   : > { %v712_v56 = vsel %vm702_vm0, %v1910_v49, -inf  ;;  %873 = vmatpush.bf16.msrb.mxu0 %v856_v22  ;;  %v1333_v22 = vld [vmem:[#allocation8 + $0x20] sm:$0xff] }
 0x1a4   : > { %713 = vmax.xlane.f32.xlu1 %v712_v56 }
 0x1a8   : > { %v684_v58 = vpop.f32.mrf.mxu3 }
 0x1a9   : > { %v1914_v61 = vmul.f32 0.17677669, %v684_v58 }
 0x1ab   : > { %v715_v0 = vsel %vm702_vm0, %v1914_v61, -inf }
 0x1ac   : > { %716 = vmax.xlane.f32.xlu2 %v715_v0 }
 0x1b0   : > { %v686_v2 = vpop.f32.mrf.mxu3 }
 0x1b1   : > { %v1918_v53 = vmul.f32 0.17677669, %v686_v2 }
 0x1b3   : > { %v718_v62 = vsel %vm702_vm0, %v1918_v53, -inf }
 0x1b4   : > { %719 = vmax.xlane.f32.xlu2 %v718_v62 }
 0x1b8   : > { %v689_v5 = vpop.f32.mrf.mxu3 }
 0x1b9   : > { %v1922_v6 = vmul.f32 0.17677669, %v689_v5 }
 0x1bb   : > { %v721_v9 = vsel %vm702_vm0, %v1922_v6, -inf }
 0x1bc   : > { %722 = vmax.xlane.f32.xlu0 %v721_v9 }
 0x1c0   : > { %v691_v16 = vpop.f32.mrf.mxu3 }
 0x1c1   : > { %v1926_v17 = vmul.f32 0.17677669, %v691_v16 }
 0x1c3   : > { %v724_v50 = vsel %vm702_vm0, %v1926_v17, -inf }
 0x1c4   : > { %725 = vmax.xlane.f32.xlu1 %v724_v50  ;;  %v1335_v50 = vld [vmem:[#allocation8 + $0x30] sm:$0xff] }
 0x1ff   : > { %v705_v23 = vpop.xlane.xlu0 %704 }
 0x200   : > { %v727_v24 = vsub.f32 %v1897_v29, %v705_v23  ;;  %v1332_v23 = vld [vmem:[#allocation8 + $0x18] sm:$0xff] }
 0x202   : > { %v735_v25 = vmul.f32 1.442695, %v727_v24  ;;  %v1331_v24 = vld [vmem:[#allocation8 + $0x10] sm:$0xff] }
 0x204   : > { %1454 = vpow2.f32 %v735_v25  ;;  %v1330_v25 = vld [vmem:[#allocation8 + $0x8] sm:$0xff] }
 0x207   : > { %v708_v27 = vpop.xlane.xlu0 %707 }
 0x208   : > { %v728_v28 = vsub.f32 %v1901_v26, %v708_v27  ;;  %v1329_v27 = vld [vmem:[#allocation8] sm:$0xff] }
 0x20a   : > { %v1455_v48 = vpop.eup %1454  ;;  %v737_v30 = vmul.f32 1.442695, %v728_v28 }
 0x20b   : > { %v751_v31 = vsel %vm702_vm0, %v1455_v48, 0.0  ;;  %v783_v33 = vpack.c.bf16 %v1455_v48, %v1455_v48 }
 0x20c   : > { %1456 = vpow2.f32 %v737_v30  ;;  %752 = vadd.xlane.f32.xlu2 %v751_v31 }
 0x20d   : > { %v795_v38 = vunpack.c.l.b16 %v783_v33 }
 0x20f   : > { %v711_v32 = vpop.xlane.xlu1 %710 }
 0x210   : > { %v729_v51 = vsub.f32 %v1906_v36, %v711_v32 }
 0x212   : > { %v1457_v34 = vpop.eup %1456  ;;  %v739_v35 = vmul.f32 1.442695, %v729_v51 }
 0x213   : > { %v784_v37 = vpack.c.bf16 %v1457_v34, %v1457_v34  ;;  %v754_v29 = vsel %vm702_vm0, %v1457_v34, 0.0 }
 0x214   : > { %1458 = vpow2.f32 %v739_v35  ;;  %755 = vadd.xlane.f32.xlu0 %v754_v29 }
 0x215   : > { %v796_v39 = vunpack.c.l.b16 %v784_v37 }
 0x217   : > { %v799_v26 = vpack.c.b16 %v796_v39, %v795_v38  ;;  %v714_v40 = vpop.xlane.xlu1 %713 }
 0x218   : > { %v730_v41 = vsub.f32 %v1910_v49, %v714_v40 }
 0x219   : > { %1257 = vmatmul.msk.bf16.vlgmr.msra.gmra.mxu3 %vm702_vm0, %v799_v26 }
 0x21a   : > { %v1459_v42 = vpop.eup %1458  ;;  %v741_v43 = vmul.f32 1.442695, %v730_v41 }
 0x21b   : > { %v757_v36 = vsel %vm702_vm0, %v1459_v42, 0.0  ;;  %v785_v46 = vpack.c.bf16 %v1459_v42, %v1459_v42 }
 0x21c   : > { %1460 = vpow2.f32 %v741_v43  ;;  %758 = vadd.xlane.f32.xlu1 %v757_v36 }
 0x21d   : > { %v797_v49 = vunpack.c.l.b16 %v785_v46 }
 0x21f   : > { %v717_v44 = vpop.xlane.xlu2 %716 }
 0x220   : > { %v731_v45 = vsub.f32 %v1914_v61, %v717_v44 }
 0x222   : > { %v1461_v63 = vpop.eup %1460  ;;  %v743_v52 = vmul.f32 1.442695, %v731_v45 }
 0x223   : > { %v760_v54 = vsel %vm702_vm0, %v1461_v63, 0.0  ;;  %v786_v55 = vpack.c.bf16 %v1461_v63, %v1461_v63 }
 0x224   : > { %1462 = vpow2.f32 %v743_v52  ;;  %761 = vadd.xlane.f32.xlu2 %v760_v54 }
 0x225   : > { %v798_v56 = vunpack.c.l.b16 %v786_v55 }
 0x227   : > { %v720_v57 = vpop.xlane.xlu2 %719  ;;  %v800_v59 = vpack.c.b16 %v798_v56, %v797_v49 }
 0x228   : > { %v732_v60 = vsub.f32 %v1918_v53, %v720_v57 }
 0x229   : > { %1258 = vmatmul.msk.bf16.gmra.mxu3 %vm702_vm0, %v800_v59 }
 0x22a   : > { %v1463_v58 = vpop.eup %1462  ;;  %v745_v0 = vmul.f32 1.442695, %v732_v60 }
 0x22b   : > { %v763_v61 = vsel %vm702_vm0, %v1463_v58, 0.0  ;;  %v787_v62 = vpack.c.bf16 %v1463_v58, %v1463_v58 }
 0x22c   : > { %1464 = vpow2.f32 %v745_v0  ;;  %764 = vadd.xlane.f32.xlu0 %v763_v61 }
 0x22d   : > { %v842_v53 = vunpack.c.l.b16 %v787_v62 }
 0x22f   : > { %v723_v1 = vpop.xlane.xlu0 %722 }
 0x230   : > { %v733_v2 = vsub.f32 %v1922_v6, %v723_v1 }
 0x232   : > { %v1465_v3 = vpop.eup %1464  ;;  %v747_v4 = vmul.f32 1.442695, %v733_v2 }
 0x233   : > { %v788_v5 = vpack.c.bf16 %v1465_v3, %v1465_v3  ;;  %v766_v7 = vsel %vm702_vm0, %v1465_v3, 0.0  ;;  %v1453_v3 = vld [vmem:[%s1992_s4] ss:$0 sm:$0xff] }
 0x234   : > { %1466 = vpow2.f32 %v747_v4  ;;  %767 = vadd.xlane.f32.xlu1 %v766_v7 }
 0x235   : > { %v843_v8 = vunpack.c.l.b16 %v788_v5 }
 0x237   : > { %v726_v9 = vpop.xlane.xlu1 %725  ;;  %v846_v10 = vpack.c.b16 %v843_v8, %v842_v53 }
 0x238   : > { %v734_v11 = vsub.f32 %v1926_v17, %v726_v9  ;;  %v1336_v17 = vld [vmem:[#allocation8 + $0x38] sm:$0xff] }
 0x239   : > { %1259 = vmatmul.msk.bf16.vlgmr.msrb.gmra.mxu0 %vm702_vm0, %v846_v10  ;;  %965 = vmatpush.bf16.msrb.mxu1 %v1336_v17 }
 0x23a   : > { %v1467_v47 = vpop.eup %1466  ;;  %v749_v12 = vmul.f32 1.442695, %v734_v11 }
 0x23b   : > { %v769_v6 = vsel %vm702_vm0, %v1467_v47, 0.0  ;;  %v789_v13 = vpack.c.bf16 %v1467_v47, %v1467_v47 }
 0x23c   : > { %1468 = vpow2.f32 %v749_v12  ;;  %770 = vadd.xlane.f32.xlu2 %v769_v6 }
 0x23d   : > { %v844_v18 = vunpack.c.l.b16 %v789_v13  ;;  %966 = vmatpush.bf16.msrb.mxu1 %v1335_v50 }
 0x241   : > { %967 = vmatpush.bf16.msrb.mxu1 %v1334_v21 }
 0x242   : > { %v1469_v14 = vpop.eup %1468 }
 0x243   : > { %v772_v15 = vsel %vm702_vm0, %v1469_v14, 0.0  ;;  %v790_v16 = vpack.c.bf16 %v1469_v14, %v1469_v14 }
 0x244   : > { %773 = vadd.xlane.f32.xlu0 %v772_v15 }
 0x245   : > { %v845_v19 = vunpack.c.l.b16 %v790_v16  ;;  %968 = vmatpush.bf16.msrb.mxu1 %v1333_v22 }
 0x247   : > { %v847_v20 = vpack.c.b16 %v845_v19, %v844_v18 }
 0x249   : > { %1260 = vmatmul.msk.bf16.gmra.mxu0 %vm702_vm0, %v847_v20  ;;  %969 = vmatpush.bf16.msrb.mxu1 %v1332_v23 }
 0x24d   : > { %970 = vmatpush.bf16.msrb.mxu1 %v1331_v24 }
 0x251   : > { %971 = vmatpush.bf16.msrb.mxu1 %v1330_v25 }
 0x255   : > { %972 = vmatpush.bf16.msrb.mxu1 %v1329_v27 }
 0x27f   : > { %v753_v28 = vpop.xlane.xlu2 %752 }
 0x280   : > { %1470 = vrcp.f32 %v753_v28 }
 0x286   : > { %v1471_v31 = vpop.eup %1470 }
 0x287   : > { %v756_v48 = vpop.xlane.xlu0 %755 }
 0x288   : > { %1472 = vrcp.f32 %v756_v48 }
 0x28e   : > { %v1473_v32 = vpop.eup %1472 }
 0x28f   : > { %v759_v37 = vpop.xlane.xlu1 %758 }
 0x290   : > { %1474 = vrcp.f32 %v759_v37 }
 0x296   : > { %v1475_v39 = vpop.eup %1474 }
 0x297   : > { %v762_v29 = vpop.xlane.xlu2 %761 }
 0x298   : > { %1476 = vrcp.f32 %v762_v29 }
 0x29c   : > { %v828_v30 = vpop.f32.mrf.mxu3 }
 0x29d   : > { %v885_v33 = vmul.f32 %v1471_v31, %v828_v30 }
 0x29e   : > { %v1477_v26 = vpop.eup %1476 }
 0x29f   : > { %v765_v45 = vpop.xlane.xlu0 %764 }
 0x2a4   : > { %v830_v51 = vpop.f32.mrf.mxu3 }
 0x2a5   : > { %v886_v34 = vmul.f32 %v1473_v32, %v830_v51 }
 0x2a7   : > { %v893_v35 = vpack.c.bf16 %v886_v34, %v885_v33  ;;  %v768_v44 = vpop.xlane.xlu1 %767 }
 0x2a8   : > { %1478 = vrcp.f32 %v768_v44 }
 0x2a9   : > { %973 = vmatmul.bf16.vlgmr.msrb.gmra.mxu1 %v893_v35  ;;  %1480 = vrcp.f32 %v765_v45 }
 0x2ac   : > { %v833_v38 = vpop.f32.mrf.mxu3 }
 0x2ad   : > { %v887_v41 = vmul.f32 %v1475_v39, %v833_v38 }
 0x2ae   : > { %v1479_v63 = vpop.eup %1478 }
 0x2af   : > { %v1481_v54 = vpop.eup %1480  ;;  %v771_v59 = vpop.xlane.xlu2 %770 }
 0x2b4   : > { %v835_v40 = vpop.f32.mrf.mxu3 }
 0x2b5   : > { %v888_v42 = vmul.f32 %v1477_v26, %v835_v40 }
 0x2b6   : > { %v875_v43 = vpop.f32.mrf.mxu0 }
 0x2b7   : > { %v894_v36 = vpack.c.bf16 %v888_v42, %v887_v41  ;;  %v889_v55 = vmul.f32 %v1481_v54, %v875_v43  ;;  %v774_v57 = vpop.xlane.xlu0 %773 }
 0x2b8   : > { %1482 = vrcp.f32 %v774_v57 }
 0x2b9   : > { %978 = vmatmul.bf16.gmra.mxu1 %v894_v36  ;;  %1484 = vrcp.f32 %v771_v59 }
 0x2be   : > { %v877_v46 = vpop.f32.mrf.mxu0  ;;  %v1483_v58 = vpop.eup %1482 }
 0x2bf   : > { %v890_v52 = vmul.f32 %v1479_v63, %v877_v46  ;;  %v1485_v61 = vpop.eup %1484 }
 0x2c1   : > { %v895_v56 = vpack.c.bf16 %v890_v52, %v889_v55 }
 0x2c6   : > { %v880_v49 = vpop.f32.mrf.mxu0 }
 0x2c7   : > { %v891_v1 = vmul.f32 %v1485_v61, %v880_v49 }
 0x2c9   : > { %983 = vmatmul.bf16.gmra.mxu1 %v895_v56 }
 0x2ce   : > { %v882_v60 = vpop.f32.mrf.mxu0 }
 0x2cf   : > { %v892_v0 = vmul.f32 %v1483_v58, %v882_v60 }
 0x2d1   : > { %v896_v2 = vpack.c.bf16 %v892_v0, %v891_v1 }
 0x2d9   : > { %988 = vmatmul.bf16.gmra.mxu1 %v896_v2 }
 0x326   : > { %v974_v62 = vpop.f32.mrf.mxu1 }
 0x327   : > { %v975_v5 = vadd.f32 %v1453_v3, %v974_v62 }
 0x32e   : > { %v976_v4 = vpop.f32.mrf.mxu1 }
 0x32f   : > { %v977_v7 = vadd.f32 %v1453_v3, %v976_v4 }
 0x331   : > { %v1342_v53 = vpack.c.bf16 %v977_v7, %v975_v5 }
 0x333   : > { %1343 = vst [vmem:[%s293_s28] sm:$0xff] %v1342_v53  }
 0x336   : > { %v979_v8 = vpop.f32.mrf.mxu1 }
 0x337   : > { %v980_v10 = vadd.f32 %v1453_v3, %v979_v8 }
 0x33e   : > { %v981_v9 = vpop.f32.mrf.mxu1 }
 0x33f   : > { %v982_v11 = vadd.f32 %v1453_v3, %v981_v9 }
 0x341   : > { %v1347_v47 = vpack.c.bf16 %v982_v11, %v980_v10 }
 0x343   : > { %1359 = vst [vmem:[%s293_s28 + $0x8] sm:$0xff] %v1347_v47  }
 0x346   : > { %v984_v12 = vpop.f32.mrf.mxu1 }
 0x347   : > { %v985_v13 = vadd.f32 %v1453_v3, %v984_v12 }
 0x34e   : > { %v986_v6 = vpop.f32.mrf.mxu1 }
 0x34f   : > { %v987_v14 = vadd.f32 %v1453_v3, %v986_v6 }
 0x351   : > { %v1352_v15 = vpack.c.bf16 %v987_v14, %v985_v13 }
 0x353   : > { %1360 = vst [vmem:[%s293_s28 + $0x10] sm:$0xff] %v1352_v15  }
 0x356   : > { %v989_v16 = vpop.f32.mrf.mxu1 }
 0x357   : > { %v990_v19 = vadd.f32 %v1453_v3, %v989_v16 }
 0x35e   : > { %v991_v18 = vpop.f32.mrf.mxu1 }
 0x35f   : > { %v992_v20 = vadd.f32 %v1453_v3, %v991_v18 }
 0x361   : > { %v1357_v17 = vpack.c.bf16 %v992_v20, %v990_v19 }
 0x363   : > { %1361 = vst [vmem:[%s293_s28 + $0x18] sm:$0xff] %v1357_v17  }
 0x364   : > { %1633 = shalt.err (!%p1630_p10)
}
 0x365   : > { %s1689_s17 = smov 64   ;;  %s1690_s29 = smov 4  }
 0x366   : > { %1384 = dma.vmem_to_hbm [thread:$0]  (%p1806_p3), %s1025_s13, 512, %s1027_s12, %s1011_s14, %s1689_s17, %s1689_s17, %s1690_s29  }
 0x367 PF: > { %s1041_s28 = sand.u32 1, %s1668_s18   ;;  %p2002_p12 = scmp.ge.s32.totalorder %s1680_s21, 2 }
 0x368   : > { %s1042_s16 = scalar_lea.sflag [#allocation4], %s1041_s28 }
 0x369   : > { %p1401_p13 = pnand %p2002_p12, %p1756_p6 }
 0x36b   : > { %p1402_p0 = pneg %p1401_p13 }
 0x36d   : > { %1663 = dma.done.wait (%p1402_p0), %s1042_s16, 512  }
 0x36e   : > { %1665 = vsyncadd (%p1402_p0), %s1042_s16, 4294966784  ;;  %p20_p5 = scmp.ge.s32.totalorder %s1793_s30, 4   ;;  %s2003_s18 = smov %s1672_s19 }
 0x36f   : > { %s2004_s19 = smov %s1676_s20  ;;  %s2005_s20 = smov %s1802_s9 }
 0x370   : > { %s2006_s21 = smov %s1793_s30  ;;  %22 = sbr.rel (!%p20_p5) target bundleno = 7 (0x7), region = 97 }
 0x375   :  { %1048 = vsyncpa [#allocation3], 1 }
 0x376   :  { %1050 = vsyncpa [#allocation3 + $0x1], 1 }
 0x377   :  { %1051 = vsyncpa [#allocation6], 1 }
 0x378   :  { %1052 = vsyncpa [#allocation9], 1 }
 0x379   :  { %1053 = vsyncpa [#allocation4], 1 }
 0x37a   :  { %1055 = vsyncpa [#allocation4 + $0x1], 1 }

</bundles_post_ra>
